<compile_context>
chip_gen: v6e
topology: v6e:2x2x1
jax: 0.10.0
libtpu: 0.0.40
codegen_flags: <defaults>
</compile_context>

<pallas_src>
import functools
import math

import numpy as np
import jax
import jax.numpy as jnp
from jax.experimental import pallas as pl
from jax.experimental.pallas import tpu as pltpu


def _round_up(a, b):
    return (a + b - 1) // b * b


def _entropy_rows_kernel(x_ref, m_ref, msq_ref, ent_ref, *, entropy_type):
    # x_ref:   (TILE_N, D)  query rows (x_i, plus mean(m) as the last real row)
    # m_ref:   (K, D)       cluster centers (resident across grid steps)
    # msq_ref: (1, K)       precomputed ||m_k||^2
    # ent_ref: (TILE_N, 1)  per-row entropy
    x = x_ref[...].astype(jnp.float32)
    m = m_ref[...].astype(jnp.float32)
    m_sq = msq_ref[...]                                   # (1, K) f32

    # logits = -||x_i - m_k||^2 + ||x_i||^2  (row-constant shift, softmax-invariant)
    #        = 2 * <x_i, m_k> - ||m_k||^2
    dots = jax.lax.dot_general(
        x, m, (((1,), (1,)), ((), ())), preferred_element_type=jnp.float32
    )                                                      # (TILE_N, K) on the MXU
    logits = 2.0 * dots - m_sq

    # Numerically stable row softmax.
    mx = jnp.max(logits, axis=-1, keepdims=True)
    e = jnp.exp(logits - mx)
    p = e / jnp.sum(e, axis=-1, keepdims=True)

    # Matches the module's torch.where clamps (p<=0 -> 1e-16, p>=1 -> 1-1e-16).
    eps = 1e-16
    p = jnp.clip(p, eps, 1.0 - eps)

    if entropy_type == "shannon":
        ent = -jnp.sum(p * jnp.log(p), axis=-1, keepdims=True)
    else:  # 'kapur'
        ent = -jnp.sum(p * jnp.log(p) + (1.0 - p) * jnp.log(1.0 - p),
                       axis=-1, keepdims=True)

    ent_ref[...] = ent


def loss_unsupervised_entropy(x, m, lamb=1.0, entropy_type="shannon",
                              max_tile_n=256):
    """x: (N, D) features; m: (K, D) cluster centers. Returns (total, intra, inter)."""
    if entropy_type not in ("shannon", "kapur"):
        raise ValueError(f"unknown entropy_type: {entropy_type}")

    x = jnp.asarray(x)
    m = jnp.asarray(m)
    N, D = x.shape
    K, D2 = m.shape
    assert D == D2, "feature dims of x and m must match"

    # ||m_k||^2 once, as a lane-vector (1, K).
    m_f32 = m.astype(jnp.float32)
    m_sq = jnp.sum(m_f32 * m_f32, axis=1)[None, :]         # (1, K)

    # Append the "inter" query row (mean of cluster centers) so one pallas_call
    # produces both the per-sample entropies and the center-mean entropy.
    m_mean = jnp.mean(m_f32, axis=0, keepdims=True).astype(x.dtype)
    xq = jnp.concatenate([x, m_mean], axis=0)              # (N + 1, D)

    n_total = N + 1
    tile_n = min(max_tile_n, _round_up(n_total, 8))        # multiple of 8 sublanes
    n_pad = _round_up(n_total, tile_n)
    if n_pad != n_total:
        xq = jnp.pad(xq, ((0, n_pad - n_total), (0, 0)))   # dummy rows, ignored

    grid = (n_pad // tile_n,)
    kernel = functools.partial(_entropy_rows_kernel, entropy_type=entropy_type)

    x_itemsize = jnp.dtype(xq.dtype).itemsize
    m_itemsize = jnp.dtype(m.dtype).itemsize
    cost = pl.CostEstimate(
        flops=int(2 * n_pad * K * D + 10 * n_pad * K),
        transcendentals=int(2 * n_pad * K),                # exp + log per element
        bytes_accessed=int(n_pad * D * x_itemsize + K * D * m_itemsize
                           + K * 4 + n_pad * 4),
    )

    ent = pl.pallas_call(
        kernel,
        out_shape=jax.ShapeDtypeStruct((n_pad, 1), jnp.float32),
        grid_spec=pltpu.PrefetchScalarGridSpec(
            num_scalar_prefetch=0,
            grid=grid,
            in_specs=[
                pl.BlockSpec((tile_n, D), lambda i: (i, 0)),   # x tiles (pipelined)
                pl.BlockSpec((K, D), lambda i: (0, 0)),        # m, VMEM resident
                pl.BlockSpec((1, K), lambda i: (0, 0)),        # ||m||^2, resident
            ],
            out_specs=pl.BlockSpec((tile_n, 1), lambda i: (i, 0)),
        ),
        compiler_params=pltpu.CompilerParams(
            dimension_semantics=("parallel",),             # megacore on v7x
        ),
        cost_estimate=cost,
    )(xq, m, m_sq)

    ent = ent[:, 0]
    # TODO(synk): the final tiny scalar reductions (mean over N entropies and
    # total = intra - lamb * inter) are plain JAX ops; not worth a kernel.
    intra = jnp.mean(ent[:N])
    inter = ent[N]
    total = intra - lamb * inter
    return total, intra, inter


def _reference(x, m, lamb=1.0, entropy_type="shannon"):
    """Pure-JAX mirror of the PyTorch forward."""
    x = x.astype(jnp.float32)
    m = m.astype(jnp.float32)

    def _p(q):
        d = jnp.linalg.norm(q[..., None, :] - m, axis=-1)
        return jax.nn.softmax(-(d ** 2), axis=-1)

    def _ent(p):
        eps = 1e-16
        p = jnp.where(p <= 0, eps, p)
        p = jnp.where(p >= 1, 1.0 - eps, p)
        if entropy_type == "shannon":
            return -jnp.sum(p * jnp.log(p), axis=-1)
        return -jnp.sum(p * jnp.log(p) + (1.0 - p) * jnp.log(1.0 - p), axis=-1)

    intra = jnp.mean(_ent(_p(x)))
    inter = _ent(_p(jnp.mean(m, axis=0)))
    total = intra - lamb * inter
    return total, intra, inter


if __name__ == "__main__":
    # Small shapes consistent with the module (feature_size=128 per docstring).
    N, num_clusters, feature_size = 8, 16, 128
    lamb = 1.0

    key = jax.random.PRNGKey(0)
    kx, km = jax.random.split(key)

    # Parameter init mirroring the module's __init__ (rand -> SVD rows -> L2-normalize),
    # done host-side with numpy exactly like the PyTorch module does.
    m_np = np.asarray(
        jax.random.uniform(km, (num_clusters, feature_size), dtype=jnp.float32)
    )
    if num_clusters < feature_size:
        _, _, vh = np.linalg.svd(m_np, full_matrices=False)
        m_np = vh
    m_np = m_np / np.linalg.norm(m_np, axis=1).reshape(-1, 1)
    m = jnp.asarray(m_np, dtype=jnp.float32)

    x = jax.random.normal(kx, (N, feature_size), dtype=jnp.float32)

    total, intra, inter = loss_unsupervised_entropy(
        x, m, lamb=lamb, entropy_type="shannon"
    )
    total = jax.block_until_ready(total)

    t_ref, a_ref, e_ref = _reference(x, m, lamb=lamb, entropy_type="shannon")
    assert jnp.isfinite(total) and jnp.isfinite(intra) and jnp.isfinite(inter)
    assert jnp.allclose(intra, a_ref, atol=1e-3, rtol=1e-3), (intra, a_ref)
    assert jnp.allclose(inter, e_ref, atol=1e-3, rtol=1e-3), (inter, e_ref)
    assert jnp.allclose(total, t_ref, atol=1e-3, rtol=1e-3), (total, t_ref)

    print("KERNEL_OK")
</pallas_src>

<mosaic_0001>
module attributes {stable_mosaic.version = 11 : i64} {
  func.func @_entropy_rows_kernel(%arg0: i32, %arg1: memref<16x128xf32, #tpu.memory_space<vmem>>, %arg2: memref<16x128xf32, #tpu.memory_space<vmem>>, %arg3: memref<1x16xf32, #tpu.memory_space<vmem>>, %arg4: memref<16x1xf32, #tpu.memory_space<vmem>>) attributes {dimension_semantics = [#tpu.dimension_semantics<parallel>], iteration_bounds = array<i64: 1>, scalar_prefetch = 0 : i64, scratch_operands = 0 : i64, tpu.core_type = #tpu.core_type<tc>, window_params = [{transform_indices = @transform_0, window_bounds = array<i64: 16, 128>}, {pipeline_mode = #tpu.pipeline_mode<synchronous>, transform_indices = @transform_1, window_bounds = array<i64: 16, 128>}, {pipeline_mode = #tpu.pipeline_mode<synchronous>, transform_indices = @transform_2, window_bounds = array<i64: 1, 16>}, {transform_indices = @transform_3, window_bounds = array<i64: 16, 1>}]} {
    %c0 = arith.constant 0 : index
    %c0_0 = arith.constant 0 : index
    %0 = vector.load %arg1[%c0, %c0_0] : memref<16x128xf32, #tpu.memory_space<vmem>>, vector<16x128xf32>
    %c0_1 = arith.constant 0 : index
    %c0_2 = arith.constant 0 : index
    %1 = vector.load %arg2[%c0_1, %c0_2] : memref<16x128xf32, #tpu.memory_space<vmem>>, vector<16x128xf32>
    %c0_3 = arith.constant 0 : index
    %c0_4 = arith.constant 0 : index
    %2 = vector.load %arg3[%c0_3, %c0_4] : memref<1x16xf32, #tpu.memory_space<vmem>>, vector<1x16xf32>
    %cst = arith.constant dense<0.000000e+00> : vector<16x16xf32>
    %3 = tpu.matmul %0, %1, %cst {dimension_numbers = #tpu.dot_dimension_numbers<[1], [1], [0], [0], [0, 0, 1, 0], [], []>} : vector<16x128xf32>, vector<16x128xf32>, vector<16x16xf32> -> vector<16x16xf32>
    %cst_5 = arith.constant 2.000000e+00 : f32
    %4 = vector.broadcast %cst_5 : f32 to vector<16x16xf32>
    %5 = arith.mulf %4, %3 : vector<16x16xf32>
    %6 = vector.broadcast %2 : vector<1x16xf32> to vector<16x16xf32>
    %7 = arith.subf %5, %6 : vector<16x16xf32>
    %cst_6 = arith.constant dense<0xFF800000> : vector<16xf32>
    %8 = vector.multi_reduction <maximumf>, %7, %cst_6 [1] : vector<16x16xf32> to vector<16xf32>
    %9 = vector.shape_cast %8 : vector<16xf32> to vector<16x1xf32>
    %10 = vector.broadcast %9 : vector<16x1xf32> to vector<16x16xf32>
    %11 = arith.subf %7, %10 : vector<16x16xf32>
    %12 = math.exp %11 : vector<16x16xf32>
    %cst_7 = arith.constant dense<0.000000e+00> : vector<16xf32>
    %13 = vector.multi_reduction <add>, %12, %cst_7 [1] : vector<16x16xf32> to vector<16xf32>
    %14 = vector.shape_cast %13 : vector<16xf32> to vector<16x1xf32>
    %15 = vector.broadcast %14 : vector<16x1xf32> to vector<16x16xf32>
    %16 = arith.divf %12, %15 : vector<16x16xf32>
    %cst_8 = arith.constant 1.000000e-16 : f32
    %cst_9 = arith.constant 1.000000e+00 : f32
    %17 = vector.broadcast %cst_8 : f32 to vector<16x16xf32>
    %18 = arith.maximumf %17, %16 : vector<16x16xf32>
    %19 = vector.broadcast %cst_9 : f32 to vector<16x16xf32>
    %20 = arith.minimumf %19, %18 : vector<16x16xf32>
    %21 = math.log %20 : vector<16x16xf32>
    %22 = arith.mulf %20, %21 : vector<16x16xf32>
    %cst_10 = arith.constant dense<0.000000e+00> : vector<16xf32>
    %23 = vector.multi_reduction <add>, %22, %cst_10 [1] : vector<16x16xf32> to vector<16xf32>
    %24 = vector.shape_cast %23 : vector<16xf32> to vector<16x1xf32>
    %cst_11 = arith.constant 0.000000e+00 : f32
    %25 = vector.broadcast %cst_11 : f32 to vector<16x1xf32>
    %26 = arith.subf %25, %24 : vector<16x1xf32>
    %c0_12 = arith.constant 0 : index
    %c0_13 = arith.constant 0 : index
    %27 = vector.load %arg4[%c0_12, %c0_13] : memref<16x1xf32, #tpu.memory_space<vmem>>, vector<16x1xf32>
    tpu.vector_store %arg4[%c0_12, %c0_13], %26 {strides = array<i32>} : memref<16x1xf32, #tpu.memory_space<vmem>>, vector<16x1xf32>,
    return
  }
  func.func @transform_0(%arg0: i32) -> (i32, i32) {
    %c0_i32 = arith.constant 0 : i32
    %c0_i32_0 = arith.constant 0 : i32
    return %arg0, %c0_i32 : i32, i32
  }
  func.func @transform_1(%arg0: i32) -> (i32, i32) {
    %c0_i32 = arith.constant 0 : i32
    %c0_i32_0 = arith.constant 0 : i32
    %c0_i32_1 = arith.constant 0 : i32
    return %c0_i32, %c0_i32_0 : i32, i32
  }
  func.func @transform_2(%arg0: i32) -> (i32, i32) {
    %c0_i32 = arith.constant 0 : i32
    %c0_i32_0 = arith.constant 0 : i32
    %c0_i32_1 = arith.constant 0 : i32
    return %c0_i32, %c0_i32_0 : i32, i32
  }
  func.func @transform_3(%arg0: i32) -> (i32, i32) {
    %c0_i32 = arith.constant 0 : i32
    %c0_i32_0 = arith.constant 0 : i32
    return %arg0, %c0_i32 : i32, i32
  }
}

</mosaic_0001>

<bundles_post_ra>
// kernel: tpu_custom_call.1
= control target key start
LH: loop header
LB: loop body
LE: loop exit
PB: predicated region body
PF: predicated region fallthrough
CT: control target
= control target key end

     0   :  { %8 = vsyncpa [#allocation3], 0  ;;  %s299_s0 = inlined_call_operand.hbm [shape: f32[16,128], index: 0, kind: input, shape index: {}]   ;;  %s300_s1 = inlined_call_operand.hbm [shape: f32[16,128], index: 1, kind: input, shape index: {}]   ;;  %s301_s2 = inlined_call_operand.vmem [shape: f32[1,16], index: 2, kind: input, shape index: {}]   ;;  %s302_s3 = inlined_call_operand.vmem [shape: f32[16,1], index: 3, kind: output, shape index: {}]  }
   0x1   :  { %9 = vsyncpa [#allocation5], 0  ;;  %s254_s12 = smov [#allocation2]  }
   0x2   :  { %s15_s13 = sshll.u32 %s254_s12, 4  ;;  %s16_s13 = int_to_ptr.vmem [resolvable:$true] %s15_s13 }
   0x3   :  { %s218_s14 = scalar_lea.vmem %s16_s13, 256  ;;  %p223_p1 = scmp.lt.s32.totalorder %s16_s13, %s16_s13 }
   0x4   :  { %p219_p0 = scmp.ne.s32.totalorder %s16_s13, %s218_s14  ;;  %p224_p2 = scmp.lt.s32.totalorder %s218_s14, %s218_s14 }
   0x6   :  { %p225_p3 = por %p224_p2, %p223_p1 }
   0x8   :  { %p226_p4 = pnand %p225_p3, %p219_p0 }
   0xa   :  { %229 = shalt.err (!%p226_p4)
}
   0xb   :  { %s255_s15 = smov 128   ;;  %s256_s16 = smov 8  }
   0xc   :  { %21 = dma.hbm_to_vmem [thread:$0]  %s299_s0, 256, %s16_s13, [#allocation3], %s255_s15, %s255_s15, %s256_s16  }
   0xd   :  { %s257_s19 = smov [#allocation4]  }
   0xe   :  { %s27_s20 = sshll.u32 %s257_s19, 4  ;;  %s28_s20 = int_to_ptr.vmem [resolvable:$true] %s27_s20 }
   0xf   :  { %s238_s21 = scalar_lea.vmem %s28_s20, 256  ;;  %p243_p6 = scmp.lt.s32.totalorder %s28_s20, %s28_s20 }
  0x10   :  { %p239_p5 = scmp.ne.s32.totalorder %s28_s20, %s238_s21  ;;  %p244_p7 = scmp.lt.s32.totalorder %s238_s21, %s238_s21 }
  0x12   :  { %p245_p8 = por %p244_p7, %p243_p6 }
  0x14   :  { %p246_p9 = pnand %p245_p8, %p239_p5 }
  0x16   :  { %249 = shalt.err (!%p246_p9)
}
  0x17   :  { %33 = dma.hbm_to_vmem [thread:$0]  %s300_s1, 256, %s28_s20, [#allocation5], %s255_s15, %s255_s15, %s256_s16  }
  0x18   :  { %250 = dma.done.wait [#allocation3], 256  }
  0x19   :  { %251 = vsyncadd [#allocation3], 4294967040 }
  0x1a   :  { %252 = dma.done.wait [#allocation5], 256  }
  0x1b   :  { %253 = vsyncadd [#allocation5], 4294967040  ;;  %v45_v0 = vld [vmem:[#allocation4 + $0x8] sm:$0xff]  ;;  %v44_v1 = vld [vmem:[#allocation4] sm:$0xff]  ;;  %vm132_vm0 = vcmask 130048   ;;  %vm173_vm1 = vcmask 7168  }
  0x1c   :  { %v42_v2 = vld [vmem:[#allocation2] sm:$0xff]  ;;  %187 = vmatprep.subr.mxu0 %v45_v0  ;;  %v43_v3 = vld [vmem:[#allocation2 + $0x8] sm:$0xff] }
  0x1d   :  { %191 = vmatprep.mubr.f32.mxu0 %v42_v2  ;;  %188 = vmatpush3.xpose.msra.mxu0 %v45_v0  ;;  %v182_v8 = vld [vmem:[%s301_s2] ss:$0 sm:$0xff] }
  0x1e   :  { %189 = vmatprep.subr.mxu0 %v44_v1 }
  0x21   :  { %190 = vmatpush3.xpose.msra.mxu0 %v44_v1 }
  0x24   :  { %192 = vmatmul.mubr.f32.vlgmr.msra.gmra.mxu0 %v43_v3 }
  0xe4   :  { %v193_v4 = vpop.f32.mrf.mxu0 }
  0xe5   :  { %v123_v6 = vmul.f32 2.0, %v193_v4 }
  0xe6   :  { %v113_v5 = vpop.f32.mrf.mxu0 }
  0xe7   :  { %v122_v7 = vmul.f32 2.0, %v113_v5  ;;  %v131_v11 = vsub.f32 %v123_v6, %v182_v8 }
  0xe9   :  { %v130_v9 = vsub.f32 %v122_v7, %v182_v8  ;;  %v136_v12 = vsel %vm132_vm0, %v131_v11, -inf }
  0xeb   :  { %v133_v10 = vsel %vm132_vm0, %v130_v9, -inf }
  0xec   :  { %134 = vmax.xlane.f32.xlu0 %v133_v10 }
  0xf0   :  { %137 = vmax.xlane.f32.xlu0 %v136_v12 }
 0x175   :  { %v135_v13 = vpop.xlane.xlu0 %134 }
 0x176   :  { %v139_v14 = vsub.f32 %v130_v9, %v135_v13 }
 0x178   :  { %v141_v15 = vmul.f32 1.442695, %v139_v14 }
 0x179   :  { %v138_v16 = vpop.xlane.xlu0 %137 }
 0x17a   :  { %198 = vpow2.f32 %v141_v15  ;;  %v140_v17 = vsub.f32 %v131_v11, %v138_v16 }
 0x17c   :  { %v143_v18 = vmul.f32 1.442695, %v140_v17 }
 0x17e   :  { %200 = vpow2.f32 %v143_v18 }
 0x187   :  { %v199_v19 = vpop.eup %198 }
 0x188   :  { %v145_v20 = vsel %vm132_vm0, %v199_v19, 0.0 }
 0x189   :  { %146 = vadd.xlane.f32.xlu1 %v145_v20 }
 0x18b   :  { %v201_v21 = vpop.eup %200 }
 0x18c   :  { %v148_v22 = vsel %vm132_vm0, %v201_v21, 0.0 }
 0x18d   :  { %149 = vadd.xlane.f32.xlu1 %v148_v22 }
 0x212   :  { %v147_v23 = vpop.xlane.xlu1 %146 }
 0x213   :  { %202 = vrcp.f32 %v147_v23 }
 0x216   :  { %v150_v24 = vpop.xlane.xlu1 %149 }
 0x217   :  { %204 = vrcp.f32 %v150_v24 }
 0x220   :  { %v203_v25 = vpop.eup %202 }
 0x221   :  { %v152_v26 = vmul.f32 %v203_v25, %v199_v19 }
 0x223   :  { %v155_v27 = vmax.f32 %v152_v26, 1e-16 }
 0x224   :  { %v205_v28 = vpop.eup %204 }
 0x225   :  { %v157_v29 = vmin.f32 %v155_v27, 1.0  ;;  %v154_v30 = vmul.f32 %v205_v28, %v201_v21 }
 0x227   :  { %206 = vlog2.f32 %v157_v29  ;;  %v156_v31 = vmax.f32 %v154_v30, 1e-16 }
 0x229   :  { %v158_v32 = vmin.f32 %v156_v31, 1.0 }
 0x22b   :  { %208 = vlog2.f32 %v158_v32 }
 0x234   :  { %v207_v33 = vpop.eup %206 }
 0x235   :  { %v160_v34 = vmul.f32 0.6931472, %v207_v33 }
 0x237   :  { %v163_v35 = vmul.f32 %v160_v34, %v157_v29 }
 0x238   :  { %v209_v36 = vpop.eup %208 }
 0x239   :  { %v165_v37 = vsel %vm132_vm0, %v163_v35, 0.0  ;;  %v162_v38 = vmul.f32 0.6931472, %v209_v36 }
 0x23a   :  { %166 = vadd.xlane.f32.xlu0 %v165_v37 }
 0x23b   :  { %v164_v39 = vmul.f32 %v162_v38, %v158_v32 }
 0x23d   :  { %v168_v40 = vsel %vm132_vm0, %v164_v39, 0.0 }
 0x23e   :  { %169 = vadd.xlane.f32.xlu1 %v168_v40 }
 0x2c3   :  { %v167_v41 = vpop.xlane.xlu0 %166 }
 0x2c4   :  { %v171_v42 = vsub.f32 0.0, %v167_v41 }
 0x2c6   :  { %174 = vst.msk [vmem:[%s302_s3] sm:$0xff] %vm173_vm1, %v171_v42 }
 0x2c7   :  { %v170_v43 = vpop.xlane.xlu1 %169 }
 0x2c8   :  { %v172_v44 = vsub.f32 0.0, %v170_v43 }
 0x2ca   :  { %175 = vst.msk [vmem:[%s302_s3 + $0x8] sm:$0xff] %vm173_vm1, %v172_v44 }
 0x2cb   :  { %180 = vsyncpa [#allocation3], 1 }
 0x2cc   :  { %181 = vsyncpa [#allocation5], 1 }

</bundles_post_ra>
